<compile_context>
chip_gen: v5e
topology: v5e:2x2
jax: 0.10.0
libtpu: 0.0.40
codegen_flags: <defaults>
</compile_context>

<pallas_src>
import functools

import jax
import jax.numpy as jnp
from jax.experimental import pallas as pl
from jax.experimental.pallas import tpu as pltpu

HIDDEN = 32    # hidden width of the MLP (nn.Linear(obs_dim, 32))
HPAD = 128     # hidden dim lane-padded to one full vreg lane width


def _round_up(x, m):
    return (x + m - 1) // m * m


def pack_params(w1, b1, w2, b2):
    """Pack parameters once (outside the hot path) into a single f32 slab.

    Math layout (y = x @ W + b):
      w1: (obs_dim, HIDDEN), b1: (HIDDEN,), w2: (HIDDEN, action_dim), b2: (action_dim,)
    Slab rows (width = round_up(max(obs_dim, action_dim), 128)):
      [0            : width          )  W1, zero-padded to (width, HPAD lanes used)
      [width                          ] b1 row (lanes [0:HIDDEN]), +7 pad rows
      [width+8      : width+8+HPAD   )  W2, zero-padded to (HPAD, width)
      [width+8+HPAD                   ] b2 row (lanes [0:action_dim]), +7 pad rows
    Zero padding is mathematically inert: padded hidden lanes come out of ReLU
    as 0 and multiply zero W2 rows; padded action lanes are masked to -inf
    before the argmax.
    """
    obs_dim = int(w1.shape[0])
    action_dim = int(w2.shape[1])
    width = _round_up(max(obs_dim, action_dim, 1), 128)

    rows = width + 8 + HPAD + 8
    slab = jnp.zeros((rows, width), jnp.float32)
    slab = slab.at[0:obs_dim, 0:HIDDEN].set(jnp.asarray(w1, jnp.float32))
    slab = slab.at[width, 0:HIDDEN].set(jnp.asarray(b1, jnp.float32))
    slab = slab.at[width + 8:width + 8 + HIDDEN, 0:action_dim].set(
        jnp.asarray(w2, jnp.float32))
    slab = slab.at[width + 8 + HPAD, 0:action_dim].set(jnp.asarray(b2, jnp.float32))
    return slab, width


def _mlp_argmax_kernel(x_ref, p_ref, out_ref, *, action_dim, width):
    """x_ref: (bt, width) f32 observations (zero-padded);
    p_ref: packed parameter slab (VMEM-resident across grid steps);
    out_ref: (bt, 1) int32 per-row argmax action index."""
    x = x_ref[...]                                          # (bt, width)
    w1 = p_ref[0:width, 0:HPAD]                             # (width, 128)
    b1 = p_ref[width:width + 1, 0:HPAD]                     # (1, 128)
    w2 = p_ref[width + 8:width + 8 + HPAD, :]               # (128, width)
    b2 = p_ref[width + 8 + HPAD:width + 9 + HPAD, :]        # (1, width)

    # Layer 1 + ReLU on the MXU; bias adds broadcast implicitly (no temps).
    h = jnp.maximum(
        jnp.dot(x, w1, preferred_element_type=jnp.float32) + b1, 0.0)   # (bt, 128)
    # Layer 2 on the MXU.
    logits = jnp.dot(h, w2, preferred_element_type=jnp.float32) + b2    # (bt, width)

    # Per-row argmax with first-hit tiebreak (matches jnp/torch argmax).
    col = jax.lax.broadcasted_iota(jnp.int32, logits.shape, 1)
    logits = jnp.where(col < action_dim, logits, -jnp.inf)  # mask padded lanes
    m = jnp.max(logits, axis=-1, keepdims=True)
    cand = jnp.where(logits == m, col, jnp.iinfo(jnp.int32).max)
    out_ref[...] = jnp.min(cand, axis=-1, keepdims=True)    # (bt, 1) int32


def make_categorical_agent_forward(obs_dim, action_dim, w1, b1, w2, b2,
                                   *, batch_tile=128):
    """Build jitted forward(x) (single obs -> scalar int32 action) and
    forward_batch(xb) ((B, obs_dim) -> (B,) int32 actions)."""
    slab, width = pack_params(w1, b1, w2, b2)
    kernel = functools.partial(_mlp_argmax_kernel, action_dim=action_dim, width=width)

    def _build_call(bt, nsteps):
        return pl.pallas_call(
            kernel,
            out_shape=jax.ShapeDtypeStruct((bt * nsteps, 1), jnp.int32),
            grid=(nsteps,),
            in_specs=[
                pl.BlockSpec((bt, width), lambda i: (i, 0)),        # batch tile of x
                pl.BlockSpec(slab.shape, lambda i: (0, 0)),         # slab: resident
            ],
            out_specs=pl.BlockSpec((bt, 1), lambda i: (i, 0)),
            compiler_params=pltpu.CompilerParams(
                dimension_semantics=("parallel",)),                 # v7x: 2 TCs
        )

    def _run(xb):
        # xb: (B, obs_dim); B is static at trace time (jit retraces per shape).
        B = xb.shape[0]
        bt = min(batch_tile, max(8, _round_up(B, 8)))
        Bp = _round_up(B, bt)
        nsteps = Bp // bt
        xf = xb.astype(jnp.float32)
        xf = jnp.pad(xf, ((0, Bp - B), (0, width - obs_dim)))
        idx = _build_call(bt, nsteps)(xf, slab)
        return idx[:B, 0]

    @jax.jit
    def forward(x):
        # Single observation: (obs_dim,) or (1, obs_dim) -> scalar int32 action.
        x = x.reshape(1, obs_dim)
        return _run(x)[0]

    @jax.jit
    def forward_batch(xb):
        # (B, obs_dim) -> (B,) int32 actions (per-row argmax).
        return _run(xb)

    return forward, forward_batch


def _reference_batch(xb, w1, b1, w2, b2):
    h = jnp.maximum(xb @ w1 + b1, 0.0)
    logits = h @ w2 + b2
    return jnp.argmax(logits, axis=-1).astype(jnp.int32)


if __name__ == "__main__":
    obs_dim, action_dim, batch = 16, 8, 64

    key = jax.random.PRNGKey(0)
    k_x, k_xb, k_w1, k_b1, k_w2, k_b2 = jax.random.split(key, 6)

    # Deterministic synthetic parameters (math layout: y = x @ W + b).
    x_single = jax.random.normal(k_x, (obs_dim,), dtype=jnp.float32)
    x_batch = jax.random.normal(k_xb, (batch, obs_dim), dtype=jnp.float32)
    w1 = jax.random.normal(k_w1, (obs_dim, HIDDEN), dtype=jnp.float32) * 0.1
    b1 = jax.random.normal(k_b1, (HIDDEN,), dtype=jnp.float32) * 0.1
    w2 = jax.random.normal(k_w2, (HIDDEN, action_dim), dtype=jnp.float32) * 0.1
    b2 = jax.random.normal(k_b2, (action_dim,), dtype=jnp.float32) * 0.1

    forward, forward_batch = make_categorical_agent_forward(
        obs_dim, action_dim, w1, b1, w2, b2)

    # Single-observation path (matches torch.argmax(logits).item()).
    action = int(jax.block_until_ready(forward(x_single)))
    ref_action = int(_reference_batch(x_single[None, :], w1, b1, w2, b2)[0])
    assert action == ref_action, f"single-obs mismatch: kernel={action} ref={ref_action}"
    assert 0 <= action < action_dim

    # Batched throughput path.
    actions = jax.block_until_ready(forward_batch(x_batch))
    ref_actions = _reference_batch(x_batch, w1, b1, w2, b2)
    assert actions.shape == (batch,)
    assert bool(jnp.all(actions == ref_actions)), "batched mismatch"
    assert bool(jnp.all((actions >= 0) & (actions < action_dim)))

    print("KERNEL_OK")
</pallas_src>

<mosaic_0001>
module attributes {stable_mosaic.version = 11 : i64} {
  func.func @_mlp_argmax_kernel(%arg0: i32, %arg1: memref<8x128xf32, #tpu.memory_space<vmem>>, %arg2: memref<272x128xf32, #tpu.memory_space<vmem>>, %arg3: memref<8x1xi32, #tpu.memory_space<vmem>>) attributes {dimension_semantics = [#tpu.dimension_semantics<parallel>], iteration_bounds = array<i64: 1>, scalar_prefetch = 0 : i64, scratch_operands = 0 : i64, tpu.core_type = #tpu.core_type<tc>, window_params = [{transform_indices = @transform_0, window_bounds = array<i64: 8, 128>}, {pipeline_mode = #tpu.pipeline_mode<synchronous>, transform_indices = @transform_1, window_bounds = array<i64: 272, 128>}, {transform_indices = @transform_2, window_bounds = array<i64: 8, 1>}]} {
    %c0 = arith.constant 0 : index
    %c0_0 = arith.constant 0 : index
    %0 = vector.load %arg1[%c0, %c0_0] : memref<8x128xf32, #tpu.memory_space<vmem>>, vector<8x128xf32>
    %c0_1 = arith.constant 0 : index
    %c0_2 = arith.constant 0 : index
    %1 = vector.load %arg2[%c0_1, %c0_2] : memref<272x128xf32, #tpu.memory_space<vmem>>, vector<128x128xf32>
    %c128 = arith.constant 128 : index
    %c0_3 = arith.constant 0 : index
    %2 = vector.load %arg2[%c128, %c0_3] : memref<272x128xf32, #tpu.memory_space<vmem>>, vector<1x128xf32>
    %c136 = arith.constant 136 : index
    %c0_4 = arith.constant 0 : index
    %3 = vector.load %arg2[%c136, %c0_4] : memref<272x128xf32, #tpu.memory_space<vmem>>, vector<128x128xf32>
    %c264 = arith.constant 264 : index
    %c0_5 = arith.constant 0 : index
    %4 = vector.load %arg2[%c264, %c0_5] : memref<272x128xf32, #tpu.memory_space<vmem>>, vector<1x128xf32>
    %cst = arith.constant dense<0.000000e+00> : vector<8x128xf32>
    %5 = tpu.matmul %0, %1, %cst {dimension_numbers = #tpu.dot_dimension_numbers<[1], [0], [0], [1], [0, 0, 1, 1], [], []>} : vector<8x128xf32>, vector<128x128xf32>, vector<8x128xf32> -> vector<8x128xf32>
    %6 = vector.broadcast %2 : vector<1x128xf32> to vector<8x128xf32>
    %7 = arith.addf %5, %6 : vector<8x128xf32>
    %cst_6 = arith.constant 0.000000e+00 : f32
    %8 = vector.broadcast %cst_6 : f32 to vector<8x128xf32>
    %9 = arith.maximumf %7, %8 : vector<8x128xf32>
    %cst_7 = arith.constant dense<0.000000e+00> : vector<8x128xf32>
    %10 = tpu.matmul %9, %3, %cst_7 {dimension_numbers = #tpu.dot_dimension_numbers<[1], [0], [0], [1], [0, 0, 1, 1], [], []>} : vector<8x128xf32>, vector<128x128xf32>, vector<8x128xf32> -> vector<8x128xf32>
    %11 = vector.broadcast %4 : vector<1x128xf32> to vector<8x128xf32>
    %12 = arith.addf %10, %11 : vector<8x128xf32>
    %13 = tpu.iota {dimensions = array<i32: 1>} : vector<8x128xi32>
    %c8_i32 = arith.constant 8 : i32
    %14 = vector.broadcast %c8_i32 : i32 to vector<8x128xi32>
    %15 = arith.cmpi slt, %13, %14 : vector<8x128xi32>
    %cst_8 = arith.constant 0xFF800000 : f32
    %16 = vector.broadcast %cst_8 : f32 to vector<8x128xf32>
    %17 = arith.select %15, %12, %16 : vector<8x128xi1>, vector<8x128xf32>
    %cst_9 = arith.constant dense<0xFF800000> : vector<8xf32>
    %18 = vector.multi_reduction <maximumf>, %17, %cst_9 [1] : vector<8x128xf32> to vector<8xf32>
    %19 = vector.shape_cast %18 : vector<8xf32> to vector<8x1xf32>
    %20 = vector.broadcast %19 : vector<8x1xf32> to vector<8x128xf32>
    %21 = arith.cmpf oeq, %17, %20 : vector<8x128xf32>
    %c2147483647_i32 = arith.constant 2147483647 : i32
    %22 = vector.broadcast %c2147483647_i32 : i32 to vector<8x128xi32>
    %23 = arith.select %21, %13, %22 : vector<8x128xi1>, vector<8x128xi32>
    %cst_10 = arith.constant dense<2147483647> : vector<8xi32>
    %24 = vector.multi_reduction <minsi>, %23, %cst_10 [1] : vector<8x128xi32> to vector<8xi32>
    %25 = vector.shape_cast %24 : vector<8xi32> to vector<8x1xi32>
    %c0_11 = arith.constant 0 : index
    %c0_12 = arith.constant 0 : index
    %26 = vector.load %arg3[%c0_11, %c0_12] : memref<8x1xi32, #tpu.memory_space<vmem>>, vector<8x1xi32>
    tpu.vector_store %arg3[%c0_11, %c0_12], %25 {strides = array<i32>} : memref<8x1xi32, #tpu.memory_space<vmem>>, vector<8x1xi32>,
    return
  }
  func.func @transform_0(%arg0: i32) -> (i32, i32) {
    %c0_i32 = arith.constant 0 : i32
    %c0_i32_0 = arith.constant 0 : i32
    return %arg0, %c0_i32 : i32, i32
  }
  func.func @transform_1(%arg0: i32) -> (i32, i32) {
    %c0_i32 = arith.constant 0 : i32
    %c0_i32_0 = arith.constant 0 : i32
    %c0_i32_1 = arith.constant 0 : i32
    return %c0_i32, %c0_i32_0 : i32, i32
  }
  func.func @transform_2(%arg0: i32) -> (i32, i32) {
    %c0_i32 = arith.constant 0 : i32
    %c0_i32_0 = arith.constant 0 : i32
    return %arg0, %c0_i32 : i32, i32
  }
}

</mosaic_0001>

<bundles_post_ra>
// kernel: forward.1
= control target key start
LH: loop header
LB: loop body
LE: loop exit
PB: predicated region body
PF: predicated region fallthrough
CT: control target
= control target key end

     0   :  { %7 = vsyncpa [#allocation3], 0  ;;  %s165_s12 = smov [#allocation2]   ;;  %s166_s14 = smov 128   ;;  %s192_s0 = inlined_call_operand.vmem [shape: f32[8,128], index: 0, kind: input, shape index: {}]   ;;  %s193_s1 = inlined_call_operand.hbm [shape: f32[272,128], index: 1, kind: input, shape index: {}]   ;;  %s194_s2 = inlined_call_operand.vmem [shape: s32[8,1], index: 2, kind: output, shape index: {}]  }
   0x1   :  { %s14_s11 = sshll.u32 %s193_s1, 4  ;;  %s16_s13 = sshll.u32 %s165_s12, 4  ;;  %s15_s11 = int_to_ptr.hbm [resolvable:$true] %s14_s11  ;;  %s17_s13 = int_to_ptr.vmem [resolvable:$true] %s16_s13 }
   0x2   :  { %s167_s15 = smov 8  }
   0x3   :  { %22 = dma.hbm_to_vmem [thread:$0]  %s15_s11, 4352, %s17_s13, [#allocation3], %s166_s14, %s166_s14, %s167_s15  }
   0x4   :  { %163 = dma.done.wait [#allocation3], 4352  }
   0x5   :  { %164 = vsyncadd [#allocation3], 4294962944  ;;  %v43_v0 = vld [vmem:[#allocation2 + $0x78] sm:$0xff]  ;;  %v42_v1 = vld [vmem:[#allocation2 + $0x70] sm:$0xff]  ;;  %v105_v37 = vlaneseq  ;;  %vm127_vm3 = vcmask 7168  }
   0x6   :  { %63 = vmatpush.msra.mxu0 %v43_v0  ;;  %v41_v2 = vld [vmem:[#allocation2 + $0x68] sm:$0xff]  ;;  %v40_v3 = vld [vmem:[#allocation2 + $0x60] sm:$0xff]  ;;  %v39_v5 = vld [vmem:[#allocation2 + $0x58] sm:$0xff] }
   0x7   :  { %v60_v4 = vld [vmem:[#allocation2 + $0x100] sm:$0xff]  ;;  %v59_v6 = vld [vmem:[#allocation2 + $0xf8] sm:$0xff]  ;;  %v58_v7 = vld [vmem:[#allocation2 + $0xf0] sm:$0xff]  ;;  %v106_v38 = vand.u32 127, %v105_v37 }
   0x8   :  { %64 = vmatpush.msra.mxu0 %v42_v1  ;;  %85 = vmatpush.msra.mxu1 %v60_v4  ;;  %v38_v8 = vld [vmem:[#allocation2 + $0x50] sm:$0xff]  ;;  %v57_v9 = vld [vmem:[#allocation2 + $0xe8] sm:$0xff]  ;;  %v56_v11 = vld [vmem:[#allocation2 + $0xe0] sm:$0xff] }
   0x9   :  { %v37_v10 = vld [vmem:[#allocation2 + $0x48] sm:$0xff]  ;;  %v36_v12 = vld [vmem:[#allocation2 + $0x40] sm:$0xff]  ;;  %v55_v13 = vld [vmem:[#allocation2 + $0xd8] sm:$0xff]  ;;  %vm107_vm0 = vcmp.lt.s32.totalorder %v106_v38, 8 }
   0xa   :  { %65 = vmatpush.msra.mxu0 %v41_v2  ;;  %86 = vmatpush.msra.mxu1 %v59_v6  ;;  %v35_v14 = vld [vmem:[#allocation2 + $0x38] sm:$0xff]  ;;  %v54_v15 = vld [vmem:[#allocation2 + $0xd0] sm:$0xff]  ;;  %v53_v17 = vld [vmem:[#allocation2 + $0xc8] sm:$0xff] }
   0xb   :  { %v34_v16 = vld [vmem:[#allocation2 + $0x30] sm:$0xff]  ;;  %v33_v18 = vld [vmem:[#allocation2 + $0x28] sm:$0xff]  ;;  %v52_v19 = vld [vmem:[#allocation2 + $0xc0] sm:$0xff] }
   0xc   :  { %66 = vmatpush.msra.mxu0 %v40_v3  ;;  %87 = vmatpush.msra.mxu1 %v58_v7  ;;  %v32_v20 = vld [vmem:[#allocation2 + $0x20] sm:$0xff]  ;;  %v51_v21 = vld [vmem:[#allocation2 + $0xb8] sm:$0xff]  ;;  %v50_v23 = vld [vmem:[#allocation2 + $0xb0] sm:$0xff] }
   0xd   :  { %v31_v22 = vld [vmem:[#allocation2 + $0x18] sm:$0xff]  ;;  %v30_v24 = vld [vmem:[#allocation2 + $0x10] sm:$0xff]  ;;  %v49_v25 = vld [vmem:[#allocation2 + $0xa8] sm:$0xff] }
   0xe   :  { %67 = vmatpush.msra.mxu0 %v39_v5  ;;  %88 = vmatpush.msra.mxu1 %v57_v9  ;;  %v29_v26 = vld [vmem:[#allocation2 + $0x8] sm:$0xff]  ;;  %v48_v27 = vld [vmem:[#allocation2 + $0xa0] sm:$0xff]  ;;  %v47_v30 = vld [vmem:[#allocation2 + $0x98] sm:$0xff] }
   0xf   :  { %v28_v28 = vld [vmem:[#allocation2] sm:$0xff]  ;;  %v46_v31 = vld [vmem:[#allocation2 + $0x90] sm:$0xff]  ;;  %v45_v32 = vld [vmem:[#allocation2 + $0x88] sm:$0xff] }
  0x10   :  { %68 = vmatpush.msra.mxu0 %v38_v8  ;;  %89 = vmatpush.msra.mxu1 %v56_v11  ;;  %v27_v29 = vld [vmem:[%s192_s0] sm:$0xff]  ;;  %v138_v39 = vld [vmem:[#allocation2 + $0x108] ss:$0 sm:$0xff] }
  0x11   :  { %v137_v33 = vld [vmem:[#allocation2 + $0x80] ss:$0 sm:$0xff] }
  0x12   :  { %69 = vmatpush.msra.mxu0 %v37_v10  ;;  %90 = vmatpush.msra.mxu1 %v55_v13 }
  0x14   :  { %70 = vmatpush.msra.mxu0 %v36_v12  ;;  %91 = vmatpush.msra.mxu1 %v54_v15 }
  0x16   :  { %71 = vmatpush.msra.mxu0 %v35_v14  ;;  %92 = vmatpush.msra.mxu1 %v53_v17 }
  0x18   :  { %72 = vmatpush.msra.mxu0 %v34_v16  ;;  %93 = vmatpush.msra.mxu1 %v52_v19 }
  0x1a   :  { %73 = vmatpush.msra.mxu0 %v33_v18  ;;  %94 = vmatpush.msra.mxu1 %v51_v21 }
  0x1c   :  { %74 = vmatpush.msra.mxu0 %v32_v20  ;;  %95 = vmatpush.msra.mxu1 %v50_v23 }
  0x1e   :  { %75 = vmatpush.msra.mxu0 %v31_v22  ;;  %96 = vmatpush.msra.mxu1 %v49_v25 }
  0x20   :  { %76 = vmatpush.msra.mxu0 %v30_v24  ;;  %97 = vmatpush.msra.mxu1 %v48_v27 }
  0x22   :  { %77 = vmatpush.msra.mxu0 %v29_v26  ;;  %98 = vmatpush.msra.mxu1 %v47_v30 }
  0x24   :  { %78 = vmatpush.msra.mxu0 %v28_v28  ;;  %99 = vmatpush.msra.mxu1 %v46_v31 }
  0x25   :  { %79 = vmatmul.f32.vlgmr.msra.gmra.mxu0 %v27_v29 }
  0x26   :  { %100 = vmatpush.msra.mxu1 %v45_v32 }
  0xa2   :  { %v80_v34 = vpop.f32.mrf.mxu0 }
  0xa3   :  { %v81_v35 = vadd.f32 %v137_v33, %v80_v34 }
  0xa5   :  { %v83_v36 = vmax.f32 %v81_v35, 0.0 }
  0xa7   :  { %101 = vmatmul.f32.vlgmr.msra.gmra.mxu1 %v83_v36 }
 0x124   :  { %v102_v40 = vpop.f32.mrf.mxu1 }
 0x125   :  { %v103_v41 = vadd.f32 %v138_v39, %v102_v40 }
 0x127   :  { %v108_v42 = vsel %vm107_vm0, %v103_v41, -inf }
 0x128   :  { %109 = vmax.xlane.f32.xlu0 %v108_v42 }
 0x19b   :  { %v110_v43 = vpop.xlane.xlu0 %109 }
 0x19c   :  { %vm111_vm1 = vcmp.eq.f32.partialorder %v108_v42, %v110_v43 }
 0x19d   :  { %v112_v44 = vsel %vm111_vm1, %v106_v38, 2147483647 }
 0x19e   :  { %v114_v45 = vshra.s32 %v112_v44, 16  ;;  %v113_v47 = vand.u32 65535, %v112_v44 }
 0x1a0   :  { %v116_v46 = vcvt.s32.f32 %v114_v45  ;;  %v115_v49 = vcvt.s32.f32 %v113_v47 }
 0x1a2   :  { %117 = vmin.xlane.f32.xlu0 %v116_v46 }
 0x215   :  { %v118_v48 = vpop.xlane.xlu0 %117 }
 0x216   :  { %vm119_vm2 = vcmp.eq.f32.partialorder %v116_v46, %v118_v48  ;;  %v124_v51 = vcvt.f32.s32 %v118_v48 }
 0x217   :  { %v120_v50 = vsel %vm119_vm2, %v115_v49, inf }
 0x218   :  { %121 = vmin.xlane.f32.xlu1 %v120_v50  ;;  %v125_v53 = vshll.u32 %v124_v51, 16 }
 0x28b   :  { %v122_v52 = vpop.xlane.xlu1 %121 }
 0x28c   :  { %v123_v54 = vcvt.f32.s32 %v122_v52 }
 0x28e   :  { %v126_v55 = vadd.s32 %v125_v53, %v123_v54 }
 0x290   :  { %128 = vst.msk [vmem:[%s194_s2] sm:$0xff] %vm127_vm3, %v126_v55 }
 0x291   :  { %133 = vsyncpa [#allocation3], 1 }

</bundles_post_ra>
